<compile_context>
chip_gen: v5e
topology: v5e:2x2
jax: 0.10.0
libtpu: 0.0.40
codegen_flags: <defaults>
</compile_context>

<pallas_src>
import functools

import jax
import jax.numpy as jnp
from jax.experimental import pallas as pl
from jax.experimental.pallas import tpu as pltpu


def _round_up(x, m):
    return ((x + m - 1) // m) * m


def _pick_tile(total, unit, cap):
    """Largest multiple of `unit` that divides `total` and is <= cap (floor: unit)."""
    best = unit
    d = unit
    limit = min(total, max(cap, unit))
    while d <= limit:
        if total % d == 0:
            best = d
        d += unit
    return best


def _shrink_tile(total, unit, current):
    """Next smaller multiple of `unit` dividing `total`, floor at `unit`."""
    d = current - unit
    while d >= unit:
        if total % d == 0:
            return d
        d -= unit
    return unit


def _vmem_bytes(tm, tk, tn, k_pad, in_bytes):
    """Estimate VMEM footprint: double-buffered in/out blocks + f32 accumulator."""
    dbl = 2
    x_b = tm * k_pad * in_bytes
    w1_b = k_pad * tk * in_bytes
    b1_b = tk * 4
    w2_b = tk * tn * in_bytes
    b2_b = tn * 4
    out_b = tm * tn * 4
    acc_b = tm * tn * 4
    return dbl * (x_b + w1_b + b1_b + w2_b + b2_b + out_b) + acc_b


def _vmem_budget_bytes():
    """~75% of physical VMEM (generation-aware); conservative fallback = v7x 64 MiB."""
    physical = 64 * 1024 * 1024
    try:
        info = pltpu.get_tpu_info()
        physical = int(getattr(info, "vmem_capacity_bytes", physical))
    except Exception:
        pass
    return int(physical * 0.75)


def _num_tensorcores():
    try:
        return max(1, int(getattr(jax.devices()[0], "num_cores", 1)))
    except Exception:
        return 1


def _mlp_kernel(x_ref, w1_ref, b1_ref, w2_ref, b2_ref, o_ref, acc_ref):
    """Grid = (batch tile i, output tile j, hidden tile k). Accumulate fc3 over k."""
    k = pl.program_id(2)

    @pl.when(k == 0)
    def _():
        acc_ref[...] = jnp.zeros_like(acc_ref)

    # fc1 for this hidden slab + bias + ReLU (f32 accumulation on the MXU),
    # then partial fc3 into the f32 accumulator.
    h = jnp.dot(x_ref[...], w1_ref[...], preferred_element_type=jnp.float32)
    h = jnp.maximum(h + b1_ref[...], 0.0)
    acc_ref[...] += jnp.dot(h.astype(w2_ref.dtype), w2_ref[...],
                            preferred_element_type=jnp.float32)

    @pl.when(k == pl.num_programs(2) - 1)
    def _():
        o_ref[...] = (acc_ref[...] + b2_ref[...]).astype(o_ref.dtype)


def prepare_params(w1, b1, w2, b2, *, use_bf16=False):
    """Pad parameters ONCE to lane/sublane-aligned shapes (done outside the hot path).

    w1: (K, H), b1: (H,) or (1, H), w2: (H, N), b2: (N,) or (1, N).
    Returns padded (w1p, b1p, w2p, b2p) and the true output width N.
    """
    K, H = w1.shape
    H2, N = w2.shape
    assert H == H2
    K_pad = _round_up(K, 128)
    H_pad = _round_up(H, 128)
    N_pad = _round_up(N, 128)

    wdt = jnp.bfloat16 if use_bf16 else w1.dtype
    w1p = jnp.zeros((K_pad, H_pad), wdt).at[:K, :H].set(w1.astype(wdt))
    w2p = jnp.zeros((H_pad, N_pad), wdt).at[:H, :N].set(w2.astype(wdt))
    # Biases stay f32: they are added to f32 MXU results.
    b1p = jnp.zeros((1, H_pad), jnp.float32).at[:, :H].set(
        b1.reshape(1, H).astype(jnp.float32))
    b2p = jnp.zeros((1, N_pad), jnp.float32).at[:, :N].set(
        b2.reshape(1, N).astype(jnp.float32))
    return w1p, b1p, w2p, b2p, N


@functools.partial(jax.jit,
                   static_argnames=("out_features", "block_b", "block_h", "block_n"))
def fully_connected_net(x, w1p, b1p, w2p, b2p, *, out_features,
                        block_b=256, block_h=1024, block_n=512):
    """x: (B, K) unpadded. w1p/b1p/w2p/b2p: pre-padded params from prepare_params.

    Returns (B, out_features) in x.dtype. Compute dtype follows w1p.dtype
    (f32 by default; bf16 if prepare_params(use_bf16=True)).
    """
    B, K = x.shape
    K_pad, H_pad = w1p.shape
    N_pad = w2p.shape[1]
    N = out_features

    compute_dtype = w1p.dtype
    in_bytes = jnp.dtype(compute_dtype).itemsize
    budget = _vmem_budget_bytes()
    num_tc = _num_tensorcores()

    # ---- tile selection (all static, trace-time Python) -------------------
    B_pad8 = _round_up(B, 8)
    tm = min(block_b, B_pad8)
    # On multi-TC chips (v7x) keep >= 2 batch tiles so the "parallel" axis
    # actually splits across TensorCores.
    if num_tc >= 2 and B_pad8 >= 16 and B_pad8 // tm < 2:
        tm = _round_up((B_pad8 + 1) // 2, 8)

    tk = _pick_tile(H_pad, 128, block_h)   # hidden (reduction) tile
    tn = _pick_tile(N_pad, 128, block_n)   # output tile

    # Greedy shrink to fit the per-generation VMEM budget:
    # tk first (W1+W2 slabs), then tn (W2/out/acc), then tm (x/out/acc).
    while _vmem_bytes(tm, tk, tn, K_pad, in_bytes) > budget:
        if tk > 128:
            tk = _shrink_tile(H_pad, 128, tk)
        elif tn > 128:
            tn = _shrink_tile(N_pad, 128, tn)
        elif tm > 8:
            tm = max(8, ((tm // 2) // 8) * 8)
        else:
            break

    B_pad = _round_up(B, tm)

    # ---- pad only the activations per call --------------------------------
    xp = jnp.zeros((B_pad, K_pad), compute_dtype).at[:B, :K].set(
        x.astype(compute_dtype))

    grid = (B_pad // tm, N_pad // tn, H_pad // tk)

    out = pl.pallas_call(
        _mlp_kernel,
        out_shape=jax.ShapeDtypeStruct((B_pad, N_pad), x.dtype),
        grid_spec=pltpu.PrefetchScalarGridSpec(
            num_scalar_prefetch=0,
            grid=grid,
            in_specs=[
                # x tile: constant across j and k -> stays VMEM-resident.
                pl.BlockSpec((tm, K_pad), lambda i, j, k: (i, 0)),
                # fc1 weight / bias slabs for hidden tile k.
                pl.BlockSpec((K_pad, tk), lambda i, j, k: (0, k)),
                pl.BlockSpec((1, tk), lambda i, j, k: (0, k)),
                # fc3 weight slab for (hidden k, output j).
                pl.BlockSpec((tk, tn), lambda i, j, k: (k, j)),
                # fc3 bias slab for output tile j.
                pl.BlockSpec((1, tn), lambda i, j, k: (0, j)),
            ],
            out_specs=pl.BlockSpec((tm, tn), lambda i, j, k: (i, j)),
            scratch_shapes=[pltpu.VMEM((tm, tn), jnp.float32)],
        ),
        compiler_params=pltpu.CompilerParams(
            dimension_semantics=("parallel", "parallel", "arbitrary"),
            vmem_limit_bytes=budget,
        ),
    )(xp, w1p, b1p, w2p, b2p)

    return out[:B, :N]


def init_linear_params(key, in_features, out_features, dtype=jnp.float32):
    """Deterministic init mimicking torch.nn.Linear: U(-1/sqrt(fan_in), 1/sqrt(fan_in))."""
    kw, kb = jax.random.split(key)
    bound = 1.0 / (in_features ** 0.5)
    # Stored as (in, out) so the kernel computes x @ W directly.
    w = jax.random.uniform(kw, (in_features, out_features), dtype, -bound, bound)
    b = jax.random.uniform(kb, (1, out_features), dtype, -bound, bound)
    return w, b


if __name__ == "__main__":
    # Small shapes consistent with the module: batch=8, input=16, hidden=32, output=4.
    # NOTE: at toy shapes launch overhead dominates; the tiling/budgeting above
    # is aimed at production-scale B / hidden / output sizes.
    input_size, hidden_size, output_size = 16, 32, 4
    batch = 8

    key = jax.random.PRNGKey(0)
    k_x, k_fc1, k_fc3 = jax.random.split(key, 3)

    x = jax.random.normal(k_x, (batch, input_size), jnp.float32)
    w1, b1 = init_linear_params(k_fc1, input_size, hidden_size)
    w2, b2 = init_linear_params(k_fc3, hidden_size, output_size)

    # Pad/stage parameters once (the per-call path only pads x).
    w1p, b1p, w2p, b2p, n_out = prepare_params(w1, b1, w2, b2, use_bf16=False)

    out = fully_connected_net(x, w1p, b1p, w2p, b2p, out_features=n_out)
    out = jax.block_until_ready(out)

    # Pure-JAX reference (same semantics as the PyTorch forward).
    ref = jnp.maximum(x @ w1 + b1, 0.0) @ w2 + b2
    assert out.shape == (batch, output_size)
    assert jnp.allclose(out, ref, atol=1e-4, rtol=1e-4), float(jnp.max(jnp.abs(out - ref)))

    print("KERNEL_OK")
</pallas_src>

<mosaic_0001>
module attributes {stable_mosaic.version = 11 : i64} {
  func.func @_mlp_kernel(%arg0: i32, %arg1: i32, %arg2: i32, %arg3: memref<8x128xf32, #tpu.memory_space<vmem>>, %arg4: memref<128x128xf32, #tpu.memory_space<vmem>>, %arg5: memref<1x128xf32, #tpu.memory_space<vmem>>, %arg6: memref<128x128xf32, #tpu.memory_space<vmem>>, %arg7: memref<1x128xf32, #tpu.memory_space<vmem>>, %arg8: memref<8x128xf32, #tpu.memory_space<vmem>>, %arg9: memref<8x128xf32, #tpu.memory_space<vmem>>) attributes {dimension_semantics = [#tpu.dimension_semantics<parallel>, #tpu.dimension_semantics<parallel>, #tpu.dimension_semantics<arbitrary>], iteration_bounds = array<i64: 1, 1, 1>, scalar_prefetch = 0 : i64, scratch_operands = 1 : i64, tpu.core_type = #tpu.core_type<tc>, window_params = [{transform_indices = @transform_0, window_bounds = array<i64: 8, 128>}, {transform_indices = @transform_1, window_bounds = array<i64: 128, 128>}, {transform_indices = @transform_2, window_bounds = array<i64: 1, 128>}, {transform_indices = @transform_3, window_bounds = array<i64: 128, 128>}, {transform_indices = @transform_4, window_bounds = array<i64: 1, 128>}, {transform_indices = @transform_5, window_bounds = array<i64: 8, 128>}]} {
    %c0_i32 = arith.constant 0 : i32
    %0 = arith.cmpi eq, %arg2, %c0_i32 : i32
    %1 = arith.extui %0 : i1 to i32
    %c0_i32_0 = arith.constant 0 : i32
    %2 = arith.cmpi ne, %1, %c0_i32_0 : i32
    scf.if %2 {
      %cst_16 = arith.constant 0.000000e+00 : f32
      %19 = vector.broadcast %cst_16 : f32 to vector<8x128xf32>
      %c0_17 = arith.constant 0 : index
      %c0_18 = arith.constant 0 : index
      %20 = vector.load %arg9[%c0_17, %c0_18] : memref<8x128xf32, #tpu.memory_space<vmem>>, vector<8x128xf32>
      tpu.vector_store %arg9[%c0_17, %c0_18], %19 {strides = array<i32>} : memref<8x128xf32, #tpu.memory_space<vmem>>, vector<8x128xf32>,
    } else {
    }
    %c0 = arith.constant 0 : index
    %c0_1 = arith.constant 0 : index
    %3 = vector.load %arg3[%c0, %c0_1] : memref<8x128xf32, #tpu.memory_space<vmem>>, vector<8x128xf32>
    %c0_2 = arith.constant 0 : index
    %c0_3 = arith.constant 0 : index
    %4 = vector.load %arg4[%c0_2, %c0_3] : memref<128x128xf32, #tpu.memory_space<vmem>>, vector<128x128xf32>
    %cst = arith.constant dense<0.000000e+00> : vector<8x128xf32>
    %5 = tpu.matmul %3, %4, %cst {dimension_numbers = #tpu.dot_dimension_numbers<[1], [0], [0], [1], [0, 0, 1, 1], [], []>} : vector<8x128xf32>, vector<128x128xf32>, vector<8x128xf32> -> vector<8x128xf32>
    %c0_4 = arith.constant 0 : index
    %c0_5 = arith.constant 0 : index
    %6 = vector.load %arg5[%c0_4, %c0_5] : memref<1x128xf32, #tpu.memory_space<vmem>>, vector<1x128xf32>
    %7 = vector.broadcast %6 : vector<1x128xf32> to vector<8x128xf32>
    %8 = arith.addf %5, %7 : vector<8x128xf32>
    %cst_6 = arith.constant 0.000000e+00 : f32
    %9 = vector.broadcast %cst_6 : f32 to vector<8x128xf32>
    %10 = arith.maximumf %8, %9 : vector<8x128xf32>
    %c0_7 = arith.constant 0 : index
    %c0_8 = arith.constant 0 : index
    %11 = vector.load %arg9[%c0_7, %c0_8] : memref<8x128xf32, #tpu.memory_space<vmem>>, vector<8x128xf32>
    %c0_9 = arith.constant 0 : index
    %c0_10 = arith.constant 0 : index
    %12 = vector.load %arg6[%c0_9, %c0_10] : memref<128x128xf32, #tpu.memory_space<vmem>>, vector<128x128xf32>
    %cst_11 = arith.constant dense<0.000000e+00> : vector<8x128xf32>
    %13 = tpu.matmul %10, %12, %cst_11 {dimension_numbers = #tpu.dot_dimension_numbers<[1], [0], [0], [1], [0, 0, 1, 1], [], []>} : vector<8x128xf32>, vector<128x128xf32>, vector<8x128xf32> -> vector<8x128xf32>
    %14 = arith.addf %11, %13 : vector<8x128xf32>
    %c0_12 = arith.constant 0 : index
    %c0_13 = arith.constant 0 : index
    %15 = vector.load %arg9[%c0_12, %c0_13] : memref<8x128xf32, #tpu.memory_space<vmem>>, vector<8x128xf32>
    tpu.vector_store %arg9[%c0_12, %c0_13], %14 {strides = array<i32>} : memref<8x128xf32, #tpu.memory_space<vmem>>, vector<8x128xf32>,
    %c0_i32_14 = arith.constant 0 : i32
    %16 = arith.cmpi eq, %arg2, %c0_i32_14 : i32
    %17 = arith.extui %16 : i1 to i32
    %c0_i32_15 = arith.constant 0 : i32
    %18 = arith.cmpi ne, %17, %c0_i32_15 : i32
    scf.if %18 {
      %c0_16 = arith.constant 0 : index
      %c0_17 = arith.constant 0 : index
      %19 = vector.load %arg9[%c0_16, %c0_17] : memref<8x128xf32, #tpu.memory_space<vmem>>, vector<8x128xf32>
      %c0_18 = arith.constant 0 : index
      %c0_19 = arith.constant 0 : index
      %20 = vector.load %arg7[%c0_18, %c0_19] : memref<1x128xf32, #tpu.memory_space<vmem>>, vector<1x128xf32>
      %21 = vector.broadcast %20 : vector<1x128xf32> to vector<8x128xf32>
      %22 = arith.addf %19, %21 : vector<8x128xf32>
      %c0_20 = arith.constant 0 : index
      %c0_21 = arith.constant 0 : index
      %23 = vector.load %arg8[%c0_20, %c0_21] : memref<8x128xf32, #tpu.memory_space<vmem>>, vector<8x128xf32>
      tpu.vector_store %arg8[%c0_20, %c0_21], %22 {strides = array<i32>} : memref<8x128xf32, #tpu.memory_space<vmem>>, vector<8x128xf32>,
    } else {
    }
    return
  }
  func.func @transform_0(%arg0: i32, %arg1: i32, %arg2: i32) -> (i32, i32) {
    %c0_i32 = arith.constant 0 : i32
    %c0_i32_0 = arith.constant 0 : i32
    return %arg0, %c0_i32 : i32, i32
  }
  func.func @transform_1(%arg0: i32, %arg1: i32, %arg2: i32) -> (i32, i32) {
    %c0_i32 = arith.constant 0 : i32
    %c0_i32_0 = arith.constant 0 : i32
    return %c0_i32, %arg2 : i32, i32
  }
  func.func @transform_2(%arg0: i32, %arg1: i32, %arg2: i32) -> (i32, i32) {
    %c0_i32 = arith.constant 0 : i32
    %c0_i32_0 = arith.constant 0 : i32
    return %c0_i32, %arg2 : i32, i32
  }
  func.func @transform_3(%arg0: i32, %arg1: i32, %arg2: i32) -> (i32, i32) {
    %c0_i32 = arith.constant 0 : i32
    return %arg2, %arg1 : i32, i32
  }
  func.func @transform_4(%arg0: i32, %arg1: i32, %arg2: i32) -> (i32, i32) {
    %c0_i32 = arith.constant 0 : i32
    %c0_i32_0 = arith.constant 0 : i32
    return %c0_i32, %arg1 : i32, i32
  }
  func.func @transform_5(%arg0: i32, %arg1: i32, %arg2: i32) -> (i32, i32) {
    %c0_i32 = arith.constant 0 : i32
    return %arg0, %arg1 : i32, i32
  }
}

</mosaic_0001>

<bundles_post_ra>
// kernel: fully_connected_net.1
= control target key start
LH: loop header
LB: loop body
LE: loop exit
PB: predicated region body
PF: predicated region fallthrough
CT: control target
= control target key end

     0   :  { %10 = vsyncpa [#allocation4], 0  ;;  %s264_s0 = inlined_call_operand.vmem [shape: f32[8,128], index: 0, kind: input, shape index: {}]   ;;  %s265_s1 = inlined_call_operand.hbm [shape: f32[128,128], index: 1, kind: input, shape index: {}]   ;;  %s266_s2 = inlined_call_operand.vmem [shape: f32[1,128], index: 2, kind: input, shape index: {}]   ;;  %s267_s3 = inlined_call_operand.hbm [shape: f32[128,128], index: 3, kind: input, shape index: {}]   ;;  %s268_s4 = inlined_call_operand.vmem [shape: f32[1,128], index: 4, kind: input, shape index: {}]   ;;  %s269_s5 = inlined_call_operand.vmem [shape: f32[8,128], index: 5, kind: output, shape index: {}]  }
   0x1   :  { %s18_s20 = sshll.u32 %s265_s1, 4  ;;  %s19_s20 = int_to_ptr.hbm [resolvable:$true] %s18_s20 }
   0x2   :  { %11 = vsyncpa [#allocation6], 0  ;;  %s212_s21 = smov [#allocation3]   ;;  %s33_s25 = sshll.u32 %s267_s3, 4  ;;  %s34_s25 = int_to_ptr.hbm [resolvable:$true] %s33_s25 }
   0x3   :  { %s20_s22 = sshll.u32 %s212_s21, 4  ;;  %s213_s26 = smov 128   ;;  %s21_s22 = int_to_ptr.vmem [resolvable:$true] %s20_s22 }
   0x4   :  { %s214_s27 = smov 8   ;;  %s215_s28 = smov [#allocation5]  }
   0x5   :  { %26 = dma.hbm_to_vmem [thread:$0]  %s19_s20, 2048, %s21_s22, [#allocation4], %s213_s26, %s213_s26, %s214_s27  }
   0x6   :  { %s35_s29 = sshll.u32 %s215_s28, 4  ;;  %s36_s29 = int_to_ptr.vmem [resolvable:$true] %s35_s29 }
   0x7   :  { %41 = dma.hbm_to_vmem [thread:$0]  %s34_s25, 2048, %s36_s29, [#allocation6], %s213_s26, %s213_s26, %s214_s27  }
   0x8   :  { %208 = dma.done.wait [#allocation4], 2048  }
   0x9   :  { %209 = vsyncadd [#allocation4], 4294965248 }
   0xa   :  { %210 = dma.done.wait [#allocation6], 2048  }
   0xb   :  { %211 = vsyncadd [#allocation6], 4294965248  ;;  %v73_v0 = vld [vmem:[#allocation3 + $0x78] sm:$0xff]  ;;  %v72_v1 = vld [vmem:[#allocation3 + $0x70] sm:$0xff] }
   0xc   :  { %78 = vmatpush.msra.mxu0 %v73_v0  ;;  %v71_v2 = vld [vmem:[#allocation3 + $0x68] sm:$0xff]  ;;  %v70_v3 = vld [vmem:[#allocation3 + $0x60] sm:$0xff]  ;;  %v115_v4 = vld [vmem:[#allocation5 + $0x78] sm:$0xff] }
   0xd   :  { %v69_v5 = vld [vmem:[#allocation3 + $0x58] sm:$0xff]  ;;  %116 = vmatpush.msra.mxu1 %v115_v4  ;;  %v114_v6 = vld [vmem:[#allocation5 + $0x70] sm:$0xff]  ;;  %v113_v7 = vld [vmem:[#allocation5 + $0x68] sm:$0xff] }
   0xe   :  { %79 = vmatpush.msra.mxu0 %v72_v1  ;;  %v68_v8 = vld [vmem:[#allocation3 + $0x50] sm:$0xff]  ;;  %v112_v9 = vld [vmem:[#allocation5 + $0x60] sm:$0xff]  ;;  %v67_v10 = vld [vmem:[#allocation3 + $0x48] sm:$0xff] }
   0xf   :  { %117 = vmatpush.msra.mxu1 %v114_v6  ;;  %v111_v11 = vld [vmem:[#allocation5 + $0x58] sm:$0xff]  ;;  %v66_v12 = vld [vmem:[#allocation3 + $0x40] sm:$0xff]  ;;  %v110_v13 = vld [vmem:[#allocation5 + $0x50] sm:$0xff] }
  0x10   :  { %80 = vmatpush.msra.mxu0 %v71_v2  ;;  %v65_v14 = vld [vmem:[#allocation3 + $0x38] sm:$0xff]  ;;  %v109_v15 = vld [vmem:[#allocation5 + $0x48] sm:$0xff]  ;;  %v64_v16 = vld [vmem:[#allocation3 + $0x30] sm:$0xff] }
  0x11   :  { %118 = vmatpush.msra.mxu1 %v113_v7  ;;  %v108_v17 = vld [vmem:[#allocation5 + $0x40] sm:$0xff]  ;;  %v63_v18 = vld [vmem:[#allocation3 + $0x28] sm:$0xff]  ;;  %v107_v19 = vld [vmem:[#allocation5 + $0x38] sm:$0xff] }
  0x12   :  { %81 = vmatpush.msra.mxu0 %v70_v3  ;;  %v62_v20 = vld [vmem:[#allocation3 + $0x20] sm:$0xff]  ;;  %v106_v21 = vld [vmem:[#allocation5 + $0x30] sm:$0xff]  ;;  %v61_v22 = vld [vmem:[#allocation3 + $0x18] sm:$0xff] }
  0x13   :  { %119 = vmatpush.msra.mxu1 %v112_v9  ;;  %v105_v23 = vld [vmem:[#allocation5 + $0x28] sm:$0xff]  ;;  %v60_v24 = vld [vmem:[#allocation3 + $0x10] sm:$0xff]  ;;  %v104_v25 = vld [vmem:[#allocation5 + $0x20] sm:$0xff] }
  0x14   :  { %82 = vmatpush.msra.mxu0 %v69_v5  ;;  %v59_v26 = vld [vmem:[#allocation3 + $0x8] sm:$0xff]  ;;  %v103_v27 = vld [vmem:[#allocation5 + $0x18] sm:$0xff]  ;;  %v58_v28 = vld [vmem:[#allocation3] sm:$0xff] }
  0x15   :  { %120 = vmatpush.msra.mxu1 %v111_v11  ;;  %v57_v29 = vld [vmem:[%s264_s0] sm:$0xff]  ;;  %v102_v30 = vld [vmem:[#allocation5 + $0x10] sm:$0xff]  ;;  %v101_v31 = vld [vmem:[#allocation5 + $0x8] sm:$0xff] }
  0x16   :  { %83 = vmatpush.msra.mxu0 %v68_v8  ;;  %v100_v32 = vld [vmem:[#allocation5] sm:$0xff] }
  0x17   :  { %121 = vmatpush.msra.mxu1 %v110_v13  ;;  %v158_v33 = vld [vmem:[%s266_s2] ss:$0 sm:$0xff] }
  0x18   :  { %84 = vmatpush.msra.mxu0 %v67_v10  ;;  %v159_v37 = vld [vmem:[%s268_s4] ss:$0 sm:$0xff] }
  0x19   :  { %122 = vmatpush.msra.mxu1 %v109_v15 }
  0x1a   :  { %85 = vmatpush.msra.mxu0 %v66_v12 }
  0x1b   :  { %123 = vmatpush.msra.mxu1 %v108_v17 }
  0x1c   :  { %86 = vmatpush.msra.mxu0 %v65_v14 }
  0x1d   :  { %124 = vmatpush.msra.mxu1 %v107_v19 }
  0x1e   :  { %87 = vmatpush.msra.mxu0 %v64_v16 }
  0x1f   :  { %125 = vmatpush.msra.mxu1 %v106_v21 }
  0x20   :  { %88 = vmatpush.msra.mxu0 %v63_v18 }
  0x21   :  { %126 = vmatpush.msra.mxu1 %v105_v23 }
  0x22   :  { %89 = vmatpush.msra.mxu0 %v62_v20 }
  0x23   :  { %127 = vmatpush.msra.mxu1 %v104_v25 }
  0x24   :  { %90 = vmatpush.msra.mxu0 %v61_v22 }
  0x25   :  { %128 = vmatpush.msra.mxu1 %v103_v27 }
  0x26   :  { %91 = vmatpush.msra.mxu0 %v60_v24 }
  0x27   :  { %129 = vmatpush.msra.mxu1 %v102_v30 }
  0x28   :  { %92 = vmatpush.msra.mxu0 %v59_v26 }
  0x29   :  { %130 = vmatpush.msra.mxu1 %v101_v31 }
  0x2a   :  { %93 = vmatpush.msra.mxu0 %v58_v28 }
  0x2b   :  { %94 = vmatmul.f32.vlgmr.msra.gmra.mxu0 %v57_v29  ;;  %131 = vmatpush.msra.mxu1 %v100_v32 }
  0xa8   :  { %v95_v34 = vpop.f32.mrf.mxu0 }
  0xa9   :  { %v96_v35 = vadd.f32 %v158_v33, %v95_v34 }
  0xab   :  { %v98_v36 = vmax.f32 %v96_v35, 0.0 }
  0xad   :  { %132 = vmatmul.f32.vlgmr.msra.gmra.mxu1 %v98_v36 }
 0x12a   :  { %v133_v38 = vpop.f32.mrf.mxu1 }
 0x12b   :  { %v146_v39 = vadd.f32 %v159_v37, %v133_v38 }
 0x12d   :  { %147 = vst [vmem:[%s269_s5] sm:$0xff] %v146_v39 }
 0x12e   :  { %152 = vsyncpa [#allocation4], 1 }
 0x12f   :  { %153 = vsyncpa [#allocation6], 1 }

</bundles_post_ra>
